<compile_context>
chip_gen: v7x
topology: tpu7x:2x2x1
jax: 0.10.0
libtpu: 0.0.40
codegen_flags: <defaults>
</compile_context>

<pallas_src>
import functools

import jax
import jax.numpy as jnp
from jax.experimental import pallas as pl
from jax.experimental.pallas import tpu as pltpu

_VMEM_LIMIT = 32 * 1024 * 1024   # modest & safe on v5e/v6e/v7x (v7x physical VMEM = 64 MiB)
_SMALL_M = 256                   # layers with fewer output rows skip the tiled MXU path


def _leaky(y, alpha):
    """LeakyReLU; statically skipped when alpha == 1.0 (identity)."""
    if alpha == 1.0:
        return y
    return jnp.where(y >= 0, y, alpha * y)


# ---------------------------------------------------------------------------
# Pallas kernel 1: single-block-K matmul + bias + LeakyReLU (spatial convs)
# ---------------------------------------------------------------------------
def _mm_bias_act_kernel(a_ref, w_ref, b_ref, o_ref, *, alpha):
    y = jnp.dot(a_ref[...], w_ref[...], preferred_element_type=jnp.float32)
    y = y + b_ref[...]
    y = _leaky(y, alpha)
    o_ref[...] = y.astype(o_ref.dtype)


def matmul_bias_act(a, w, b, alpha):
    """leaky_relu(a @ w + b, alpha).  a:(M,K) bf16, w:(K,N) bf16, b:(N,) f32 -> (M,N) bf16."""
    M, K = a.shape
    N = w.shape[1]
    if M < _SMALL_M:   # tiny tail layers: plain jnp, no pallas_call / padding overhead
        y = jnp.dot(a.astype(jnp.float32), w.astype(jnp.float32)) + b
        return _leaky(y, alpha).astype(a.dtype)

    # Pick the largest M tile that divides M to avoid any padding copy; pad only if needed.
    tm = next((c for c in (512, 256, 128) if M % c == 0), None)
    pad_rows = 0
    if tm is None:
        tm = 512
        pad_rows = (-M) % tm
        a = jnp.pad(a, ((0, pad_rows), (0, 0)))
    Mp = M + pad_rows
    b2 = b.reshape(1, N).astype(jnp.float32)

    out = pl.pallas_call(
        functools.partial(_mm_bias_act_kernel, alpha=float(alpha)),
        out_shape=jax.ShapeDtypeStruct((Mp, N), jnp.bfloat16),
        grid_spec=pltpu.PrefetchScalarGridSpec(
            num_scalar_prefetch=0,
            grid=(Mp // tm,),                                   # M-only grid: K and N are single full blocks
            in_specs=[
                pl.BlockSpec((tm, K), lambda i: (i, 0)),        # full (unpadded) K block -> no k loop
                pl.BlockSpec((K, N), lambda i: (0, 0)),         # whole weight resident in VMEM
                pl.BlockSpec((1, N), lambda i: (0, 0)),
            ],
            out_specs=pl.BlockSpec((tm, N), lambda i: (i, 0)),  # true N: no pad->slice round trip
        ),
        compiler_params=pltpu.CompilerParams(
            dimension_semantics=("parallel",),
            vmem_limit_bytes=_VMEM_LIMIT),
    )(a, w, b2)
    return out[:M] if pad_rows else out


# ---------------------------------------------------------------------------
# Pallas kernel 2: fused temporal conv (taps = reduction grid axis, no im2col)
# ---------------------------------------------------------------------------
def _temporal_conv_kernel(x_ref, w_ref, b_ref, o_ref, acc_ref, *, alpha):
    kk = pl.program_id(2)

    @pl.when(kk == 0)
    def _():
        acc_ref[...] = jnp.zeros_like(acc_ref)

    acc_ref[...] += jnp.dot(x_ref[...], w_ref[...], preferred_element_type=jnp.float32)

    @pl.when(kk == pl.num_programs(2) - 1)
    def _():
        y = acc_ref[...] + b_ref[...]
        y = _leaky(y, alpha)
        o_ref[...] = y.astype(o_ref.dtype)


def conv_temporal(x, wk, b, alpha):
    """Conv3d (4,1,1), stride 1, valid.  x:(n,T,H,W,Cin) bf16, wk:(4,Cin,Cout) bf16."""
    n, t, h, wd, cin = x.shape
    kt, _, cout = wk.shape
    to = t - kt + 1
    hw = h * wd
    rows = n * to * hw
    if rows < _SMALL_M:   # e.g. the final cout=1 conv: a handful of rows -> plain jnp
        taps = [x[:, dt:dt + to] for dt in range(kt)]
        patches = jnp.concatenate(taps, axis=-1).reshape(rows, kt * cin)
        y = jnp.dot(patches.astype(jnp.float32),
                    wk.reshape(kt * cin, cout).astype(jnp.float32)) + b
        return _leaky(y, alpha).astype(x.dtype).reshape(n, to, h, wd, cout)

    xr = x.reshape(n, t, hw, cin)
    out = pl.pallas_call(
        functools.partial(_temporal_conv_kernel, alpha=float(alpha)),
        out_shape=jax.ShapeDtypeStruct((n, to, hw, cout), jnp.bfloat16),
        grid_spec=pltpu.PrefetchScalarGridSpec(
            num_scalar_prefetch=0,
            grid=(n, to, kt),
            in_specs=[
                # time-shifted frame fetched directly from the activation tensor (no patches):
                pl.BlockSpec((None, None, hw, cin), lambda bb, tt, kk: (bb, tt + kk, 0, 0)),
                pl.BlockSpec((None, cin, cout), lambda bb, tt, kk: (kk, 0, 0)),
                pl.BlockSpec((1, cout), lambda bb, tt, kk: (0, 0)),
            ],
            out_specs=pl.BlockSpec((None, None, hw, cout), lambda bb, tt, kk: (bb, tt, 0, 0)),
            scratch_shapes=[pltpu.VMEM((hw, cout), jnp.float32)],
        ),
        compiler_params=pltpu.CompilerParams(
            dimension_semantics=("parallel", "parallel", "arbitrary"),
            vmem_limit_bytes=_VMEM_LIMIT),
    )(xr, wk, b.reshape(1, cout).astype(jnp.float32))
    return out.reshape(n, to, h, wd, cout)


# ---------------------------------------------------------------------------
# Spatial conv wrapper (bf16 im2col glue + Pallas matmul hot path)
# ---------------------------------------------------------------------------
def conv_spatial(x, wmat, b, stride, pad, alpha):
    """Conv3d (1,4,4).  x:(n,T,H,W,Cin) bf16, wmat:(16*Cin,Cout) bf16 in (kh,kw,cin) row order."""
    n, t, h, wd, cin = x.shape
    cout = wmat.shape[1]
    kh = kw = 4
    if pad:
        x = jnp.pad(x, ((0, 0), (0, 0), (pad, pad), (pad, pad), (0, 0)))
    ho = (h + 2 * pad - kh) // stride + 1
    wo = (wd + 2 * pad - kw) // stride + 1
    taps = []
    for ih in range(kh):
        for iw in range(kw):
            taps.append(x[:, :,
                          ih:ih + stride * (ho - 1) + 1:stride,
                          iw:iw + stride * (wo - 1) + 1:stride, :])
    # TODO(synk): fuse the 16 strided taps into the kernel's reduction axis (manual strided DMA)
    # to avoid materializing the bf16 patch tensor; kept as bf16 im2col for robustness.
    patches = jnp.concatenate(taps, axis=-1)                 # (n,t,ho,wo,16*cin) bf16
    a = patches.reshape(n * t * ho * wo, kh * kw * cin)
    y = matmul_bias_act(a, wmat, b, alpha)
    return y.reshape(n, t, ho, wo, cout)


# ---------------------------------------------------------------------------
# Parameters (deterministic, synthetic) + spectral norm
# ---------------------------------------------------------------------------
def spectral_normalize(w, iters=30):
    """Divide conv weight by the spectral norm of its (Cout, -1) matrix (power iteration)."""
    wm = w.reshape(w.shape[0], -1)
    u = jnp.ones((wm.shape[0],), jnp.float32) / jnp.sqrt(jnp.float32(wm.shape[0]))
    v = None
    for _ in range(iters):
        v = wm.T @ u
        v = v / (jnp.linalg.norm(v) + 1e-12)
        u = wm @ v
        u = u / (jnp.linalg.norm(u) + 1e-12)
    sigma = u @ (wm @ v)
    return w / sigma


def make_params(key, ch):
    # (kind, cin, cout) mirrors the nn.Sequential in __init__
    cfgs = [
        ("s", 3, ch),            ("t", ch, ch),
        ("s", ch, 2 * ch),       ("t", 2 * ch, 2 * ch),
        ("s", 2 * ch, 4 * ch),   ("t", 4 * ch, 4 * ch),
        ("s", 4 * ch, 8 * ch),   ("t", 8 * ch, 8 * ch),
        ("s_last", 8 * ch, 8 * ch),
        ("t", 8 * ch, 1),
    ]
    layers = []
    for kind, cin, cout in cfgs:
        key, k_w, k_b = jax.random.split(key, 3)
        shape = (cout, cin, 1, 4, 4) if kind in ("s", "s_last") else (cout, cin, 4, 1, 1)
        w = 0.02 * jax.random.normal(k_w, shape, jnp.float32)    # init.normal_(w, 0, 0.02)
        w = spectral_normalize(w)                                # spectralnorm(...)
        fan_in = cin * shape[2] * shape[3] * shape[4]
        bound = 1.0 / float(fan_in) ** 0.5
        b = jax.random.uniform(k_b, (cout,), jnp.float32, -bound, bound)
        if kind in ("s", "s_last"):
            # (cout,cin,1,4,4) -> (kh,kw,cin,cout) -> (16*cin, cout): matches tap stacking order
            wmat = jnp.transpose(w[:, :, 0], (2, 3, 1, 0)).reshape(-1, cout)
        else:
            # (cout,cin,4,1,1) -> (kt, cin, cout)
            wmat = jnp.transpose(w[:, :, :, 0, 0], (2, 1, 0))
        layers.append((kind, wmat.astype(jnp.bfloat16), b.astype(jnp.float32)))
    return layers


# ---------------------------------------------------------------------------
# Forward pass
# ---------------------------------------------------------------------------
def video_discriminator_forward(x_ncdhw, layers):
    # PyTorch input is NCDHW: (N, 3, T, H, W) -> channels-last bf16 (N, T, H, W, C)
    x = jnp.transpose(x_ncdhw, (0, 2, 3, 4, 1)).astype(jnp.bfloat16)
    n_layers = len(layers)
    for i, (kind, wmat, b) in enumerate(layers):
        alpha = 1.0 if i == n_layers - 1 else 0.2    # last conv has no LeakyReLU
        if kind == "s":
            x = conv_spatial(x, wmat, b, stride=2, pad=1, alpha=alpha)
        elif kind == "s_last":
            x = conv_spatial(x, wmat, b, stride=1, pad=0, alpha=alpha)
        else:
            x = conv_temporal(x, wmat, b, alpha=alpha)
    # back to NCDHW: (N, 1, T', H', W'), then .squeeze(-1) x 4 like the module
    out = jnp.transpose(x, (0, 4, 1, 2, 3)).astype(jnp.float32)
    for _ in range(4):
        if out.shape[-1] == 1:
            out = out.reshape(out.shape[:-1])
    return out


if __name__ == "__main__":
    key = jax.random.PRNGKey(0)
    kx, kp = jax.random.split(key)
    ch = 16                                   # small synthetic width (module default is 64)
    # Smallest input that fully reduces: T=16 (5 temporal convs), spatial 64 (4 stride-2 + 4x4 valid)
    x = jax.random.normal(kx, (2, 3, 16, 64, 64), jnp.float32)
    layers = make_params(kp, ch)
    out = video_discriminator_forward(x, layers)
    jax.block_until_ready(out)
    assert out.shape == (2,), out.shape
    print("KERNEL_OK")
</pallas_src>

<mosaic_0001>
module attributes {stable_mosaic.version = 11 : i64} {
  func.func @_mm_bias_act_kernel(%arg0: i32, %arg1: memref<512x48xbf16, #tpu.memory_space<vmem>>, %arg2: memref<48x16xbf16, #tpu.memory_space<vmem>>, %arg3: memref<1x16xf32, #tpu.memory_space<vmem>>, %arg4: memref<512x16xbf16, #tpu.memory_space<vmem>>) attributes {dimension_semantics = [#tpu.dimension_semantics<parallel>], iteration_bounds = array<i64: 64>, scalar_prefetch = 0 : i64, scratch_operands = 0 : i64, tpu.core_type = #tpu.core_type<tc>, window_params = [{transform_indices = @transform_0, window_bounds = array<i64: 512, 48>}, {pipeline_mode = #tpu.pipeline_mode<synchronous>, transform_indices = @transform_1, window_bounds = array<i64: 48, 16>}, {pipeline_mode = #tpu.pipeline_mode<synchronous>, transform_indices = @transform_2, window_bounds = array<i64: 1, 16>}, {transform_indices = @transform_3, window_bounds = array<i64: 512, 16>}]} {
    %c0 = arith.constant 0 : index
    %c0_0 = arith.constant 0 : index
    %0 = vector.load %arg1[%c0, %c0_0] : memref<512x48xbf16, #tpu.memory_space<vmem>>, vector<512x48xbf16>
    %c0_1 = arith.constant 0 : index
    %c0_2 = arith.constant 0 : index
    %1 = vector.load %arg2[%c0_1, %c0_2] : memref<48x16xbf16, #tpu.memory_space<vmem>>, vector<48x16xbf16>
    %cst = arith.constant dense<0.000000e+00> : vector<512x16xf32>
    %2 = tpu.matmul %0, %1, %cst {dimension_numbers = #tpu.dot_dimension_numbers<[1], [0], [0], [1], [0, 0, 1, 1], [], []>} : vector<512x48xbf16>, vector<48x16xbf16>, vector<512x16xf32> -> vector<512x16xf32>
    %c0_3 = arith.constant 0 : index
    %c0_4 = arith.constant 0 : index
    %3 = vector.load %arg3[%c0_3, %c0_4] : memref<1x16xf32, #tpu.memory_space<vmem>>, vector<1x16xf32>
    %4 = vector.broadcast %3 : vector<1x16xf32> to vector<512x16xf32>
    %5 = arith.addf %2, %4 : vector<512x16xf32>
    %cst_5 = arith.constant 0.000000e+00 : f32
    %6 = vector.broadcast %cst_5 : f32 to vector<512x16xf32>
    %7 = arith.cmpf oge, %5, %6 : vector<512x16xf32>
    %cst_6 = arith.constant 2.000000e-01 : f32
    %8 = vector.broadcast %cst_6 : f32 to vector<512x16xf32>
    %9 = arith.mulf %8, %5 : vector<512x16xf32>
    %10 = arith.select %7, %5, %9 : vector<512x16xi1>, vector<512x16xf32>
    %11 = arith.truncf %10 : vector<512x16xf32> to vector<512x16xbf16>
    %c0_7 = arith.constant 0 : index
    %c0_8 = arith.constant 0 : index
    %12 = vector.load %arg4[%c0_7, %c0_8] : memref<512x16xbf16, #tpu.memory_space<vmem>>, vector<512x16xbf16>
    tpu.vector_store %arg4[%c0_7, %c0_8], %11 {strides = array<i32>} : memref<512x16xbf16, #tpu.memory_space<vmem>>, vector<512x16xbf16>,
    return
  }
  func.func @transform_0(%arg0: i32) -> (i32, i32) {
    %c0_i32 = arith.constant 0 : i32
    %c0_i32_0 = arith.constant 0 : i32
    return %arg0, %c0_i32 : i32, i32
  }
  func.func @transform_1(%arg0: i32) -> (i32, i32) {
    %c0_i32 = arith.constant 0 : i32
    %c0_i32_0 = arith.constant 0 : i32
    %c0_i32_1 = arith.constant 0 : i32
    return %c0_i32, %c0_i32_0 : i32, i32
  }
  func.func @transform_2(%arg0: i32) -> (i32, i32) {
    %c0_i32 = arith.constant 0 : i32
    %c0_i32_0 = arith.constant 0 : i32
    %c0_i32_1 = arith.constant 0 : i32
    return %c0_i32, %c0_i32_0 : i32, i32
  }
  func.func @transform_3(%arg0: i32) -> (i32, i32) {
    %c0_i32 = arith.constant 0 : i32
    %c0_i32_0 = arith.constant 0 : i32
    return %arg0, %c0_i32 : i32, i32
  }
}

</mosaic_0001>

<bundles_post_ra>
// kernel: tpu_custom_call.1
= control target key start
LH: loop header
LB: loop body
LE: loop exit
PB: predicated region body
PF: predicated region fallthrough
CT: control target
= control target key end

     0   :  { %s1774_s12 = smov 0   ;;  %s2151_s0 = inlined_call_operand.vmem [shape: bf16[32768,48], index: 0, kind: input, shape index: {}]   ;;  %s2152_s1 = inlined_call_operand.vmem [shape: bf16[48,16], index: 1, kind: input, shape index: {}]   ;;  %s2153_s2 = inlined_call_operand.vmem [shape: f32[1,16], index: 2, kind: input, shape index: {}]   ;;  %s2154_s3 = inlined_call_operand.vmem [shape: bf16[32768,16], index: 3, kind: output, shape index: {}]  }
   0x1 LB: > { %s1385_s13 = sadd.s32 4294967295, %s1752_s12   ;;  %p1389_p0 = scmp.ge.s32.totalorder %s1752_s12, 1  ;;  %s1752_s12 = sphi %s1774_s12, %s13_s12  }
   0x2   : > { %p138_p1 = scmp.lt.s32.totalorder %s1752_s12, 65 }
   0x4   : > { %p139_p2 = pnand %p1389_p0, %p138_p1 }
   0x5   : > { %v1711_v0 = vld [vmem:[%s2152_s1] sm:$0xff] (!%p139_p2)   ;;  %s1390_s16 = sshll.u32 (!%p139_p2), %s1385_s13, 6  ;;  %v1712_v1 = vld [vmem:[%s2152_s1 + $0x8] sm:$0xff] (!%p139_p2)   ;;  %v1713_v2 = vld [vmem:[%s2152_s1 + $0x10] sm:$0xff] (!%p139_p2)   ;;  %vm430_vm0 = vcmask (!%p139_p2), 392192   ;;  %vm1264_vm1 = vcmask (!%p139_p2), 125952  }
   0x6   : > { %142 = sbr.rel (%p139_p2) target bundleno = 316 (0x13c), region = 32  ;;  %p163_p3 = scmp.lt.s32.totalorder (!%p139_p2), %s1390_s16, 4095  ;;  %1627 = vmatprep.subr.bf16.mxu0 (!%p139_p2), %v1711_v0  ;;  %1697 = vmatprep.subr.bf16.mxu1 (!%p139_p2), %v1711_v0  ;;  %v1868_v35 = vld [vmem:[%s2153_s2] ss:$0 sm:$0xff] (!%p139_p2) }
   0x7   : > { %1628 = vmatpush3.bf16.msra.mxu0 (!%p139_p2), %v1711_v0  ;;  %1700 = vmatpush3.bf16.msra.mxu1 (!%p139_p2), %v1711_v0 }
   0x8   : > { %1629 = vmatprep.subr.bf16.mxu0 (!%p139_p2), %v1712_v1  ;;  %1698 = vmatprep.subr.bf16.mxu1 (!%p139_p2), %v1712_v1 }
   0xb   : > { %1630 = vmatpush3.bf16.msra.mxu0 (!%p139_p2), %v1712_v1  ;;  %1701 = vmatpush3.bf16.msra.mxu1 (!%p139_p2), %v1712_v1 }
   0xc   : > { %1631 = vmatprep.subr.bf16.mxu0 (!%p139_p2), %v1713_v2  ;;  %1699 = vmatprep.subr.bf16.mxu1 (!%p139_p2), %v1713_v2 }
   0xd   : > { %s2156_s16 = smov (!%p163_p3, %s1390_s16), 4095 }
   0xe   : > { %s1391_s21 = sshll.u32 %s2156_s16, 2 }
   0xf   : > { %s1799_s24 = scalar_lea.vmem %s2151_s0, %s1391_s21  ;;  %1632 = vmatpush3.bf16.msra.mxu0 %v1713_v2  ;;  %1702 = vmatpush3.bf16.msra.mxu1 %v1713_v2  ;;  %s1879_s29 = scalar_lea.vmem %s2154_s3, %s1391_s21 }
  0x10   : > { %v1714_v3 = vld [vmem:[%s1799_s24] sm:$0xff]   ;;  %v1716_v5 = vld [vmem:[%s1799_s24 + $0x8] sm:$0xff]   ;;  %v1718_v7 = vld [vmem:[%s1799_s24 + $0x10] sm:$0xff]  }
  0x11   : > { %v1715_v4 = vld [vmem:[%s1799_s24 + $0x80] sm:$0xff]   ;;  %1633 = vmatprep.mubr.msk.bf16.mxu0 %vm430_vm0, %v1714_v3  ;;  %v1717_v6 = vld [vmem:[%s1799_s24 + $0x88] sm:$0xff]   ;;  %v1719_v8 = vld [vmem:[%s1799_s24 + $0x90] sm:$0xff]  }
  0x12   : > { %1665 = vmatprep.mubr.msk.bf16.mxu1 %vm430_vm0, %v1715_v4  ;;  %1634 = vmatmul.mubr.msk.bf16.vlgmr.msra.gmra.mrb[0].mxu0 %vm430_vm0, %v1716_v5  ;;  %v1720_v9 = vld [vmem:[%s1799_s24 + $0x18] sm:$0xff]   ;;  %v1722_v11 = vld [vmem:[%s1799_s24 + $0x20] sm:$0xff]   ;;  %v1724_v13 = vld [vmem:[%s1799_s24 + $0x28] sm:$0xff]  }
  0x13   : > { %1666 = vmatmul.mubr.msk.bf16.vlgmr.msra.gmra.mrb[0].mxu1 %vm430_vm0, %v1717_v6  ;;  %1637 = vmatprep.mubr.msk.bf16.mxu0 %vm430_vm0, %v1718_v7  ;;  %v1721_v10 = vld [vmem:[%s1799_s24 + $0x98] sm:$0xff]   ;;  %v1723_v12 = vld [vmem:[%s1799_s24 + $0xa0] sm:$0xff]   ;;  %v1725_v14 = vld [vmem:[%s1799_s24 + $0xa8] sm:$0xff]  }
  0x14   : > { %1669 = vmatprep.mubr.msk.bf16.mxu1 %vm430_vm0, %v1719_v8  ;;  %v1726_v15 = vld [vmem:[%s1799_s24 + $0x30] sm:$0xff]   ;;  %v1728_v17 = vld [vmem:[%s1799_s24 + $0x38] sm:$0xff]   ;;  %v1730_v19 = vld [vmem:[%s1799_s24 + $0x40] sm:$0xff]  }
  0x15   : > { %v1727_v16 = vld [vmem:[%s1799_s24 + $0xb0] sm:$0xff]   ;;  %v1729_v18 = vld [vmem:[%s1799_s24 + $0xb8] sm:$0xff]   ;;  %v1731_v20 = vld [vmem:[%s1799_s24 + $0xc0] sm:$0xff]  }
  0x16   : > { %v1732_v21 = vld [vmem:[%s1799_s24 + $0x48] sm:$0xff]   ;;  %v1734_v23 = vld [vmem:[%s1799_s24 + $0x50] sm:$0xff]   ;;  %v1736_v25 = vld [vmem:[%s1799_s24 + $0x58] sm:$0xff]  }
  0x17   : > { %v1733_v22 = vld [vmem:[%s1799_s24 + $0xc8] sm:$0xff]   ;;  %v1735_v24 = vld [vmem:[%s1799_s24 + $0xd0] sm:$0xff]   ;;  %v1737_v26 = vld [vmem:[%s1799_s24 + $0xd8] sm:$0xff]  }
  0x18   : > { %v1738_v27 = vld [vmem:[%s1799_s24 + $0x60] sm:$0xff]   ;;  %v1740_v29 = vld [vmem:[%s1799_s24 + $0x68] sm:$0xff]   ;;  %v1742_v31 = vld [vmem:[%s1799_s24 + $0x70] sm:$0xff]  }
  0x19   : > { %v1739_v28 = vld [vmem:[%s1799_s24 + $0xe0] sm:$0xff]   ;;  %v1741_v30 = vld [vmem:[%s1799_s24 + $0xe8] sm:$0xff]   ;;  %v1743_v32 = vld [vmem:[%s1799_s24 + $0xf0] sm:$0xff]  }
  0x1a   : > { %1638 = vmatmul.mubr.msk.bf16.gmra.mrb[4].mxu0 %vm430_vm0, %v1720_v9  ;;  %v1744_v33 = vld [vmem:[%s1799_s24 + $0x78] sm:$0xff]  }
  0x1b   : > { %1670 = vmatmul.mubr.msk.bf16.gmra.mrb[4].mxu1 %vm430_vm0, %v1721_v10  ;;  %1641 = vmatprep.mubr.msk.bf16.mxu0 %vm430_vm0, %v1722_v11  ;;  %v1745_v34 = vld [vmem:[%s1799_s24 + $0xf8] sm:$0xff]  }
  0x1c   : > { %1673 = vmatprep.mubr.msk.bf16.mxu1 %vm430_vm0, %v1723_v12 }
  0x22   : > { %1642 = vmatmul.mubr.msk.bf16.gmra.mrb[8].mxu0 %vm430_vm0, %v1724_v13 }
  0x23   : > { %1674 = vmatmul.mubr.msk.bf16.gmra.mrb[8].mxu1 %vm430_vm0, %v1725_v14  ;;  %1645 = vmatprep.mubr.msk.bf16.mxu0 %vm430_vm0, %v1726_v15 }
  0x24   : > { %1677 = vmatprep.mubr.msk.bf16.mxu1 %vm430_vm0, %v1727_v16 }
  0x2a   : > { %1646 = vmatmul.mubr.msk.bf16.gmra.mrb[12].mxu0 %vm430_vm0, %v1728_v17 }
  0x2b   : > { %1678 = vmatmul.mubr.msk.bf16.gmra.mrb[12].mxu1 %vm430_vm0, %v1729_v18  ;;  %1649 = vmatprep.mubr.msk.bf16.mxu0 %vm430_vm0, %v1730_v19 }
  0x2c   : > { %1681 = vmatprep.mubr.msk.bf16.mxu1 %vm430_vm0, %v1731_v20 }
  0x32   : > { %1650 = vmatmul.mubr.msk.bf16.gmra.mrb[16].mxu0 %vm430_vm0, %v1732_v21 }
  0x33   : > { %1682 = vmatmul.mubr.msk.bf16.gmra.mrb[16].mxu1 %vm430_vm0, %v1733_v22  ;;  %1653 = vmatprep.mubr.msk.bf16.mxu0 %vm430_vm0, %v1734_v23 }
  0x34   : > { %1685 = vmatprep.mubr.msk.bf16.mxu1 %vm430_vm0, %v1735_v24 }
  0x3a   : > { %1654 = vmatmul.mubr.msk.bf16.gmra.mrb[20].mxu0 %vm430_vm0, %v1736_v25 }
  0x3b   : > { %1686 = vmatmul.mubr.msk.bf16.gmra.mrb[20].mxu1 %vm430_vm0, %v1737_v26  ;;  %1657 = vmatprep.mubr.msk.bf16.mxu0 %vm430_vm0, %v1738_v27 }
  0x3c   : > { %1689 = vmatprep.mubr.msk.bf16.mxu1 %vm430_vm0, %v1739_v28 }
  0x42   : > { %1658 = vmatmul.mubr.msk.bf16.gmra.mrb[24].mxu0 %vm430_vm0, %v1740_v29 }
  0x43   : > { %1690 = vmatmul.mubr.msk.bf16.gmra.mrb[24].mxu1 %vm430_vm0, %v1741_v30  ;;  %1661 = vmatprep.mubr.msk.bf16.mxu0 %vm430_vm0, %v1742_v31 }
  0x44   : > { %1693 = vmatprep.mubr.msk.bf16.mxu1 %vm430_vm0, %v1743_v32 }
  0x4a   : > { %1662 = vmatmul.mubr.msk.bf16.gmra.mrb[28].mxu0 %vm430_vm0, %v1744_v33 }
  0x4b   : > { %1694 = vmatmul.mubr.msk.bf16.gmra.mrb[28].mxu1 %vm430_vm0, %v1745_v34 }
  0xe5   : > { %v1635_v36 = vpop.f32.mrb[0].mxu0 }
  0xe6   : > { %v1667_v37 = vpop.f32.mrb[0].mxu1  ;;  %v570_v38 = vadd.f32 %v1635_v36, %v1868_v35  ;;  %v561_v40 = vpop.f32.mrb[1].mxu0 }
  0xe7   : > { %v698_v39 = vadd.f32 %v1667_v37, %v1868_v35  ;;  %v689_v41 = vpop.f32.mrb[1].mxu1  ;;  %v562_v42 = vadd.f32 %v1868_v35, %v561_v40  ;;  %v1636_v44 = vpop.f32.mrb[2].mxu0 }
  0xe8   : > { %v690_v43 = vadd.f32 %v1868_v35, %v689_v41  ;;  %v1668_v45 = vpop.f32.mrb[2].mxu1  ;;  %vm818_vm2 = vcmp.ge.f32.partialorder %v570_v38, 0.0  ;;  %v882_v46 = vmul.f32 0.2, %v570_v38  ;;  %v573_v52 = vadd.f32 %v1636_v44, %v1868_v35  ;;  %v564_v54 = vpop.f32.mrb[3].mxu0 }
  0xe9   : > { %vm850_vm3 = vcmp.ge.f32.partialorder %v698_v39, 0.0  ;;  %v914_v47 = vmul.f32 0.2, %v698_v39  ;;  %vm816_vm4 = vcmp.ge.f32.partialorder %v562_v42, 0.0  ;;  %v880_v48 = vmul.f32 0.2, %v562_v42 }
  0xea   : > { %vm848_vm5 = vcmp.ge.f32.partialorder %v690_v43, 0.0  ;;  %v912_v49 = vmul.f32 0.2, %v690_v43  ;;  %v946_v50 = vsel %vm818_vm2, %v570_v38, %v882_v46  ;;  %v701_v53 = vadd.f32 %v1668_v45, %v1868_v35  ;;  %v692_v55 = vpop.f32.mrb[3].mxu1 }
  0xeb   : > { %v978_v51 = vsel %vm850_vm3, %v698_v39, %v914_v47  ;;  %v1530_v56 = vpack.c.bf16 %v946_v50, %v946_v50  ;;  %v944_v58 = vsel %vm816_vm4, %v562_v42, %v880_v48  ;;  %vm819_vm6 = vcmp.ge.f32.partialorder %v573_v52, 0.0 }
  0xec   : > { %v1562_v57 = vpack.c.bf16 %v978_v51, %v978_v51  ;;  %v976_v59 = vsel %vm848_vm5, %v690_v43, %v912_v49  ;;  %v1528_v60 = vpack.c.bf16 %v944_v58, %v944_v58  ;;  %v883_v62 = vmul.f32 0.2, %v573_v52 }
  0xed   : > { %v1560_v61 = vpack.c.bf16 %v976_v59, %v976_v59  ;;  %1267 = vst.msk [vmem:[%s1879_s29 + $0x8] sm:$0xf] %vm1264_vm1, %v1530_v56  ;;  %vm851_vm7 = vcmp.ge.f32.partialorder %v701_v53, 0.0  ;;  %v915_v63 = vmul.f32 0.2, %v701_v53  ;;  %v565_v0 = vadd.f32 %v1868_v35, %v564_v54  ;;  %v1639_v2 = vpop.f32.mrb[4].mxu0 }
  0xee   : > { %1299 = vst.msk [vmem:[%s1879_s29 + $0x88] sm:$0xf] %vm1264_vm1, %v1562_v57  ;;  %v693_v1 = vadd.f32 %v1868_v35, %v692_v55  ;;  %v1671_v3 = vpop.f32.mrb[4].mxu1  ;;  %1265 = vst.msk [vmem:[%s1879_s29] sm:$0xf] %vm1264_vm1, %v1528_v60  ;;  %v947_v4 = vsel %vm819_vm6, %v573_v52, %v883_v62  ;;  %v586_v5 = vadd.f32 %v1639_v2, %v1868_v35  ;;  %v577_v7 = vpop.f32.mrb[5].mxu0 }
  0xef   : > { %1297 = vst.msk [vmem:[%s1879_s29 + $0x80] sm:$0xf] %vm1264_vm1, %v1560_v61  ;;  %v714_v6 = vadd.f32 %v1671_v3, %v1868_v35  ;;  %v705_v8 = vpop.f32.mrb[5].mxu1  ;;  %v1531_v9 = vpack.c.bf16 %v947_v4, %v947_v4  ;;  %v979_v10 = vsel %vm851_vm7, %v701_v53, %v915_v63  ;;  %vm817_vm8 = vcmp.ge.f32.partialorder %v565_v0, 0.0  ;;  %v1640_v12 = vpop.f32.mrb[6].mxu0 }
  0xf0   : > { %v881_v11 = vmul.f32 0.2, %v565_v0  ;;  %v1672_v13 = vpop.f32.mrb[6].mxu1  ;;  %v1563_v14 = vpack.c.bf16 %v979_v10, %v979_v10  ;;  %vm849_vm9 = vcmp.ge.f32.partialorder %v693_v1, 0.0  ;;  %v913_v15 = vmul.f32 0.2, %v693_v1 }
  0xf1   : > { %vm822_vm10 = vcmp.ge.f32.partialorder %v586_v5, 0.0  ;;  %v580_v16 = vpop.f32.mrb[7].mxu0  ;;  %v708_v17 = vpop.f32.mrb[7].mxu1  ;;  %1268 = vst.msk [vmem:[%s1879_s29 + $0xc] sm:$0xf] %vm1264_vm1, %v1531_v9  ;;  %vm854_vm11 = vcmp.ge.f32.partialorder %v714_v6, 0.0  ;;  %v578_v23 = vadd.f32 %v1868_v35, %v577_v7  ;;  %v706_v24 = vadd.f32 %v1868_v35, %v705_v8 }
  0xf2   : > { %v945_v18 = vsel %vm817_vm8, %v565_v0, %v881_v11  ;;  %v886_v19 = vmul.f32 0.2, %v586_v5  ;;  %v918_v20 = vmul.f32 0.2, %v714_v6  ;;  %1300 = vst.msk [vmem:[%s1879_s29 + $0x8c] sm:$0xf] %vm1264_vm1, %v1563_v14  ;;  %v977_v22 = vsel %vm849_vm9, %v693_v1, %v913_v15 }
  0xf3   : > { %v1529_v21 = vpack.c.bf16 %v945_v18, %v945_v18  ;;  %v1561_v25 = vpack.c.bf16 %v977_v22, %v977_v22  ;;  %v589_v28 = vadd.f32 %v1640_v12, %v1868_v35  ;;  %vm820_vm12 = vcmp.ge.f32.partialorder %v578_v23, 0.0 }
  0xf4   : > { %v950_v26 = vsel %vm822_vm10, %v586_v5, %v886_v19  ;;  %v982_v27 = vsel %vm854_vm11, %v714_v6, %v918_v20  ;;  %v884_v31 = vmul.f32 0.2, %v578_v23  ;;  %vm852_vm13 = vcmp.ge.f32.partialorder %v706_v24, 0.0 }
  0xf5   : > { %1266 = vst.msk [vmem:[%s1879_s29 + $0x4] sm:$0xf] %vm1264_vm1, %v1529_v21  ;;  %v1534_v29 = vpack.c.bf16 %v950_v26, %v950_v26  ;;  %v1566_v30 = vpack.c.bf16 %v982_v27, %v982_v27  ;;  %1298 = vst.msk [vmem:[%s1879_s29 + $0x84] sm:$0xf] %vm1264_vm1, %v1561_v25  ;;  %v916_v32 = vmul.f32 0.2, %v706_v24  ;;  %v717_v36 = vadd.f32 %v1672_v13, %v1868_v35 }
  0xf6   : > { %vm823_vm14 = vcmp.ge.f32.partialorder %v589_v28, 0.0  ;;  %v887_v33 = vmul.f32 0.2, %v589_v28  ;;  %v948_v34 = vsel %vm820_vm12, %v578_v23, %v884_v31  ;;  %v581_v37 = vadd.f32 %v1868_v35, %v580_v16  ;;  %v1643_v39 = vpop.f32.mrb[8].mxu0  ;;  %v1675_v40 = vpop.f32.mrb[8].mxu1 }
  0xf7   : > { %1271 = vst.msk [vmem:[%s1879_s29 + $0x18] sm:$0xf] %vm1264_vm1, %v1534_v29  ;;  %1303 = vst.msk [vmem:[%s1879_s29 + $0x98] sm:$0xf] %vm1264_vm1, %v1566_v30  ;;  %v709_v38 = vadd.f32 %v1868_v35, %v708_v17  ;;  %v1532_v41 = vpack.c.bf16 %v948_v34, %v948_v34  ;;  %v980_v42 = vsel %vm852_vm13, %v706_v24, %v916_v32  ;;  %v593_v45 = vpop.f32.mrb[9].mxu0  ;;  %v721_v46 = vpop.f32.mrb[9].mxu1 }
  0xf8   : > { %v951_v43 = vsel %vm823_vm14, %v589_v28, %v887_v33  ;;  %v602_v44 = vadd.f32 %v1643_v39, %v1868_v35  ;;  %v1564_v47 = vpack.c.bf16 %v980_v42, %v980_v42  ;;  %vm855_vm15 = vcmp.ge.f32.partialorder %v717_v36, 0.0  ;;  %v1644_v50 = vpop.f32.mrb[10].mxu0  ;;  %v1676_v51 = vpop.f32.mrb[10].mxu1 }
  0xf9   : > { %v1535_v48 = vpack.c.bf16 %v951_v43, %v951_v43  ;;  %v919_v49 = vmul.f32 0.2, %v717_v36  ;;  %1269 = vst.msk [vmem:[%s1879_s29 + $0x10] sm:$0xf] %vm1264_vm1, %v1532_v41  ;;  %vm821_vm0 = vcmp.ge.f32.partialorder %v581_v37, 0.0  ;;  %vm853_vm2 = vcmp.ge.f32.partialorder %v709_v38, 0.0 }
  0xfa   : > { %v885_v52 = vmul.f32 0.2, %v581_v37  ;;  %v917_v53 = vmul.f32 0.2, %v709_v38  ;;  %1301 = vst.msk [vmem:[%s1879_s29 + $0x90] sm:$0xf] %vm1264_vm1, %v1564_v47  ;;  %v730_v56 = vadd.f32 %v1675_v40, %v1868_v35  ;;  %v594_v62 = vadd.f32 %v1868_v35, %v593_v45 }
  0xfb   : > { %1272 = vst.msk [vmem:[%s1879_s29 + $0x1c] sm:$0xf] %vm1264_vm1, %v1535_v48  ;;  %v983_v54 = vsel %vm855_vm15, %v717_v36, %v919_v49  ;;  %vm826_vm3 = vcmp.ge.f32.partialorder %v602_v44, 0.0  ;;  %v890_v55 = vmul.f32 0.2, %v602_v44  ;;  %v596_v57 = vpop.f32.mrb[11].mxu0  ;;  %v722_v6 = vadd.f32 %v1868_v35, %v721_v46 }
  0xfc   : > { %v724_v58 = vpop.f32.mrb[11].mxu1  ;;  %v1567_v59 = vpack.c.bf16 %v983_v54, %v983_v54  ;;  %v949_v60 = vsel %vm821_vm0, %v581_v37, %v885_v52  ;;  %v981_v61 = vsel %vm853_vm2, %v709_v38, %v917_v53  ;;  %vm858_vm4 = vcmp.ge.f32.partialorder %v730_v56, 0.0 }
  0xfd   : > { %v1533_v63 = vpack.c.bf16 %v949_v60, %v949_v60  ;;  %v1565_v0 = vpack.c.bf16 %v981_v61, %v981_v61  ;;  %v954_v1 = vsel %vm826_vm3, %v602_v44, %v890_v55  ;;  %v922_v3 = vmul.f32 0.2, %v730_v56  ;;  %v1647_v5 = vpop.f32.mrb[12].mxu0 }
  0xfe   : > { %1304 = vst.msk [vmem:[%s1879_s29 + $0x9c] sm:$0xf] %vm1264_vm1, %v1567_v59  ;;  %v1538_v2 = vpack.c.bf16 %v954_v1, %v954_v1  ;;  %vm824_vm5 = vcmp.ge.f32.partialorder %v594_v62, 0.0  ;;  %v888_v4 = vmul.f32 0.2, %v594_v62  ;;  %v605_v7 = vadd.f32 %v1644_v50, %v1868_v35  ;;  %v1679_v10 = vpop.f32.mrb[12].mxu1 }
  0xff   : > { %1270 = vst.msk [vmem:[%s1879_s29 + $0x14] sm:$0xf] %vm1264_vm1, %v1533_v63  ;;  %1302 = vst.msk [vmem:[%s1879_s29 + $0x94] sm:$0xf] %vm1264_vm1, %v1565_v0  ;;  %v733_v8 = vadd.f32 %v1676_v51, %v1868_v35  ;;  %v597_v9 = vadd.f32 %v1868_v35, %v596_v57  ;;  %v609_v11 = vpop.f32.mrb[13].mxu0  ;;  %v986_v12 = vsel %vm858_vm4, %v730_v56, %v922_v3  ;;  %v737_v16 = vpop.f32.mrb[13].mxu1 }
 0x100   : > { %1275 = vst.msk [vmem:[%s1879_s29 + $0x28] sm:$0xf] %vm1264_vm1, %v1538_v2  ;;  %v952_v13 = vsel %vm824_vm5, %v594_v62, %v888_v4  ;;  %v725_v14 = vadd.f32 %v1868_v35, %v724_v58  ;;  %v618_v15 = vadd.f32 %v1647_v5, %v1868_v35  ;;  %v1648_v17 = vpop.f32.mrb[14].mxu0  ;;  %v1570_v18 = vpack.c.bf16 %v986_v12, %v986_v12  ;;  %v1680_v21 = vpop.f32.mrb[14].mxu1 }
 0x101   : > { %v1536_v19 = vpack.c.bf16 %v952_v13, %v952_v13  ;;  %vm856_vm6 = vcmp.ge.f32.partialorder %v722_v6, 0.0  ;;  %v920_v20 = vmul.f32 0.2, %v722_v6  ;;  %v612_v22 = vpop.f32.mrb[15].mxu0  ;;  %vm827_vm7 = vcmp.ge.f32.partialorder %v605_v7, 0.0  ;;  %v740_v27 = vpop.f32.mrb[15].mxu1 }
 0x102   : > { %v891_v23 = vmul.f32 0.2, %v605_v7  ;;  %vm859_vm8 = vcmp.ge.f32.partialorder %v733_v8, 0.0  ;;  %v923_v24 = vmul.f32 0.2, %v733_v8  ;;  %vm825_vm9 = vcmp.ge.f32.partialorder %v597_v9, 0.0 }
 0x103   : > { %1307 = vst.msk [vmem:[%s1879_s29 + $0xa8] sm:$0xf] %vm1264_vm1, %v1570_v18  ;;  %1273 = vst.msk [vmem:[%s1879_s29 + $0x20] sm:$0xf] %vm1264_vm1, %v1536_v19  ;;  %v984_v25 = vsel %vm856_vm6, %v722_v6, %v920_v20  ;;  %v889_v26 = vmul.f32 0.2, %v597_v9  ;;  %v746_v39 = vadd.f32 %v1679_v10, %v1868_v35  ;;  %v610_v43 = vadd.f32 %v1868_v35, %v609_v11 }
 0x104   : > { %vm857_vm10 = vcmp.ge.f32.partialorder %v725_v14, 0.0  ;;  %v1568_v28 = vpack.c.bf16 %v984_v25, %v984_v25  ;;  %v955_v29 = vsel %vm827_vm7, %v605_v7, %v891_v23  ;;  %v987_v30 = vsel %vm859_vm8, %v733_v8, %v923_v24 }
 0x105   : > { %v921_v31 = vmul.f32 0.2, %v725_v14  ;;  %v1539_v32 = vpack.c.bf16 %v955_v29, %v955_v29  ;;  %v1571_v33 = vpack.c.bf16 %v987_v30, %v987_v30  ;;  %v953_v34 = vsel %vm825_vm9, %v597_v9, %v889_v26  ;;  %v1651_v40 = vpop.f32.mrb[16].mxu0 }
 0x106   : > { %vm830_vm11 = vcmp.ge.f32.partialorder %v618_v15, 0.0  ;;  %1305 = vst.msk [vmem:[%s1879_s29 + $0xa0] sm:$0xf] %vm1264_vm1, %v1568_v28  ;;  %v1537_v36 = vpack.c.bf16 %v953_v34, %v953_v34  ;;  %v894_v38 = vmul.f32 0.2, %v618_v15  ;;  %v1683_v41 = vpop.f32.mrb[16].mxu1  ;;  %v738_v44 = vadd.f32 %v1868_v35, %v737_v16 }
 0x107   : > { %v985_v37 = vsel %vm857_vm10, %v725_v14, %v921_v31  ;;  %1276 = vst.msk [vmem:[%s1879_s29 + $0x2c] sm:$0xf] %vm1264_vm1, %v1539_v32  ;;  %1308 = vst.msk [vmem:[%s1879_s29 + $0xac] sm:$0xf] %vm1264_vm1, %v1571_v33  ;;  %v621_v45 = vadd.f32 %v1648_v17, %v1868_v35  ;;  %v625_v46 = vpop.f32.mrb[17].mxu0  ;;  %v753_v47 = vpop.f32.mrb[17].mxu1  ;;  %v749_v50 = vadd.f32 %v1680_v21, %v1868_v35 }
 0x108   : > { %v1569_v42 = vpack.c.bf16 %v985_v37, %v985_v37  ;;  %1274 = vst.msk [vmem:[%s1879_s29 + $0x24] sm:$0xf] %vm1264_vm1, %v1537_v36  ;;  %v958_v48 = vsel %vm830_vm11, %v618_v15, %v894_v38  ;;  %vm862_vm12 = vcmp.ge.f32.partialorder %v746_v39, 0.0  ;;  %v926_v49 = vmul.f32 0.2, %v746_v39  ;;  %v1955_v51 = vpop.f32.mrb[18].mxu0 }
 0x109   : > { %v1957_v52 = vpop.f32.mrb[18].mxu1  ;;  %v1542_v53 = vpack.c.bf16 %v958_v48, %v958_v48  ;;  %vm828_vm13 = vcmp.ge.f32.partialorder %v610_v43, 0.0  ;;  %v892_v54 = vmul.f32 0.2, %v610_v43  ;;  %vm860_vm14 = vcmp.ge.f32.partialorder %v738_v44, 0.0  ;;  %v1961_v55 = vpop.f32.mrb[19].mxu0 }
 0x10a   : > { %1306 = vst.msk [vmem:[%s1879_s29 + $0xa4] sm:$0xf] %vm1264_vm1, %v1569_v42  ;;  %v1963_v56 = vpop.f32.mrb[19].mxu1  ;;  %v990_v57 = vsel %vm862_vm12, %v746_v39, %v926_v49  ;;  %v924_v58 = vmul.f32 0.2, %v738_v44  ;;  %vm831_vm15 = vcmp.ge.f32.partialorder %v621_v45, 0.0  ;;  %v613_v2 = vadd.f32 %v1868_v35, %v612_v22 }
 0x10b   : > { %v895_v59 = vmul.f32 0.2, %v621_v45  ;;  %1279 = vst.msk [vmem:[%s1879_s29 + $0x38] sm:$0xf] %vm1264_vm1, %v1542_v53  ;;  %v1574_v60 = vpack.c.bf16 %v990_v57, %v990_v57  ;;  %v956_v61 = vsel %vm828_vm13, %v610_v43, %v892_v54  ;;  %vm863_vm0 = vcmp.ge.f32.partialorder %v749_v50, 0.0 }
 0x10c   : > { %v927_v62 = vmul.f32 0.2, %v749_v50  ;;  %v1540_v63 = vpack.c.bf16 %v956_v61, %v956_v61  ;;  %v988_v0 = vsel %vm860_vm14, %v738_v44, %v924_v58  ;;  %v741_v6 = vadd.f32 %v1868_v35, %v740_v27 }
 0x10d   : > { %v959_v1 = vsel %vm831_vm15, %v621_v45, %v895_v59  ;;  %1311 = vst.msk [vmem:[%s1879_s29 + $0xb8] sm:$0xf] %vm1264_vm1, %v1574_v60  ;;  %v1572_v3 = vpack.c.bf16 %v988_v0, %v988_v0  ;;  %vm829_vm2 = vcmp.ge.f32.partialorder %v613_v2, 0.0  ;;  %v893_v8 = vmul.f32 0.2, %v613_v2  ;;  %v1655_v10 = vpop.f32.mrb[20].mxu0 }
 0x10e   : > { %v1543_v4 = vpack.c.bf16 %v959_v1, %v959_v1  ;;  %v991_v5 = vsel %vm863_vm0, %v749_v50, %v927_v62  ;;  %1277 = vst.msk [vmem:[%s1879_s29 + $0x30] sm:$0xf] %vm1264_vm1, %v1540_v63  ;;  %v634_v9 = vadd.f32 %v1651_v40, %v1868_v35  ;;  %v1687_v11 = vpop.f32.mrb[20].mxu1  ;;  %vm861_vm3 = vcmp.ge.f32.partialorder %v741_v6, 0.0  ;;  %v641_v15 = vpop.f32.mrb[21].mxu0 }
 0x10f   : > { %v1575_v7 = vpack.c.bf16 %v991_v5, %v991_v5  ;;  %1309 = vst.msk [vmem:[%s1879_s29 + $0xb0] sm:$0xf] %vm1264_vm1, %v1572_v3  ;;  %v925_v12 = vmul.f32 0.2, %v741_v6  ;;  %v762_v13 = vadd.f32 %v1683_v41, %v1868_v35  ;;  %v626_v14 = vadd.f32 %v1868_v35, %v625_v46  ;;  %v1980_v16 = vpop.f32.mrb[21].mxu1  ;;  %v1985_v20 = vpop.f32.mrb[22].mxu0 }
 0x110   : > { %1280 = vst.msk [vmem:[%s1879_s29 + $0x3c] sm:$0xf] %vm1264_vm1, %v1543_v4  ;;  %v957_v17 = vsel %vm829_vm2, %v613_v2, %v893_v8  ;;  %vm834_vm4 = vcmp.ge.f32.partialorder %v634_v9, 0.0  ;;  %v898_v18 = vmul.f32 0.2, %v634_v9  ;;  %v754_v19 = vadd.f32 %v1868_v35, %v753_v47  ;;  %v1987_v21 = vpop.f32.mrb[22].mxu1 }
 0x111   : > { %1312 = vst.msk [vmem:[%s1879_s29 + $0xbc] sm:$0xf] %vm1264_vm1, %v1575_v7  ;;  %v1541_v22 = vpack.c.bf16 %v957_v17, %v957_v17  ;;  %v989_v23 = vsel %vm861_vm3, %v741_v6, %v925_v12  ;;  %vm866_vm5 = vcmp.ge.f32.partialorder %v762_v13, 0.0  ;;  %v930_v24 = vmul.f32 0.2, %v762_v13  ;;  %v1989_v25 = vpop.f32.mrb[23].mxu0 }
 0x112   : > { %v1991_v26 = vpop.f32.mrb[23].mxu1  ;;  %v1573_v27 = vpack.c.bf16 %v989_v23, %v989_v23  ;;  %v962_v28 = vsel %vm834_vm4, %v634_v9, %v898_v18  ;;  %vm832_vm6 = vcmp.ge.f32.partialorder %v626_v14, 0.0  ;;  %v896_v29 = vmul.f32 0.2, %v626_v14 }
 0x113   : > { %1278 = vst.msk [vmem:[%s1879_s29 + $0x34] sm:$0xf] %vm1264_vm1, %v1541_v22  ;;  %v1546_v30 = vpack.c.bf16 %v962_v28, %v962_v28  ;;  %v994_v31 = vsel %vm866_vm5, %v762_v13, %v930_v24  ;;  %vm864_vm7 = vcmp.ge.f32.partialorder %v754_v19, 0.0  ;;  %v928_v32 = vmul.f32 0.2, %v754_v19 }
 0x114   : > { %1310 = vst.msk [vmem:[%s1879_s29 + $0xb4] sm:$0xf] %vm1264_vm1, %v1573_v27  ;;  %v1578_v33 = vpack.c.bf16 %v994_v31, %v994_v31  ;;  %v960_v34 = vsel %vm832_vm6, %v626_v14, %v896_v29  ;;  %v637_v36 = vadd.f32 %v1955_v51, %v1868_v35  ;;  %v765_v37 = vadd.f32 %v1957_v52, %v1868_v35 }
 0x115   : > { %1283 = vst.msk [vmem:[%s1879_s29 + $0x48] sm:$0xf] %vm1264_vm1, %v1546_v30  ;;  %v1544_v38 = vpack.c.bf16 %v960_v34, %v960_v34  ;;  %v992_v39 = vsel %vm864_vm7, %v754_v19, %v928_v32  ;;  %v629_v40 = vadd.f32 %v1868_v35, %v1961_v55  ;;  %v757_v41 = vadd.f32 %v1868_v35, %v1963_v56  ;;  %v2009_v44 = vpop.f32.mrb[24].mxu0 }
 0x116   : > { %1315 = vst.msk [vmem:[%s1879_s29 + $0xc8] sm:$0xf] %vm1264_vm1, %v1578_v33  ;;  %v1576_v42 = vpack.c.bf16 %v992_v39, %v992_v39  ;;  %vm835_vm8 = vcmp.ge.f32.partialorder %v637_v36, 0.0  ;;  %v899_v43 = vmul.f32 0.2, %v637_v36  ;;  %vm867_vm9 = vcmp.ge.f32.partialorder %v765_v37, 0.0 }
 0x117   : > { %v2011_v45 = vpop.f32.mrb[24].mxu1  ;;  %1281 = vst.msk [vmem:[%s1879_s29 + $0x40] sm:$0xf] %vm1264_vm1, %v1544_v38  ;;  %v931_v46 = vmul.f32 0.2, %v765_v37  ;;  %vm833_vm10 = vcmp.ge.f32.partialorder %v629_v40, 0.0  ;;  %v650_v50 = vadd.f32 %v1655_v10, %v1868_v35  ;;  %v778_v51 = vadd.f32 %v1687_v11, %v1868_v35 }
 0x118   : > { %v897_v47 = vmul.f32 0.2, %v629_v40  ;;  %vm865_vm11 = vcmp.ge.f32.partialorder %v757_v41, 0.0  ;;  %1313 = vst.msk [vmem:[%s1879_s29 + $0xc0] sm:$0xf] %vm1264_vm1, %v1576_v42  ;;  %v963_v48 = vsel %vm835_vm8, %v637_v36, %v899_v43  ;;  %v2019_v52 = vpop.f32.mrb[25].mxu0  ;;  %v642_v57 = vadd.f32 %v1868_v35, %v641_v15 }
 0x119   : > { %v929_v49 = vmul.f32 0.2, %v757_v41  ;;  %v2021_v53 = vpop.f32.mrb[25].mxu1  ;;  %v1547_v54 = vpack.c.bf16 %v963_v48, %v963_v48  ;;  %v995_v55 = vsel %vm867_vm9, %v765_v37, %v931_v46  ;;  %v2025_v58 = vpop.f32.mrb[26].mxu0  ;;  %vm838_vm12 = vcmp.ge.f32.partialorder %v650_v50, 0.0 }
 0x11a   : > { %v961_v56 = vsel %vm833_vm10, %v629_v40, %v897_v47  ;;  %v2027_v59 = vpop.f32.mrb[26].mxu1  ;;  %v1579_v60 = vpack.c.bf16 %v995_v55, %v995_v55  ;;  %v2030_v63 = vpop.f32.mrb[27].mxu0  ;;  %v902_v2 = vmul.f32 0.2, %v650_v50  ;;  %vm870_vm13 = vcmp.ge.f32.partialorder %v778_v51, 0.0 }
 0x11b   : > { %v1545_v61 = vpack.c.bf16 %v961_v56, %v961_v56  ;;  %v993_v62 = vsel %vm865_vm11, %v757_v41, %v929_v49  ;;  %v2032_v0 = vpop.f32.mrb[27].mxu1  ;;  %1284 = vst.msk [vmem:[%s1879_s29 + $0x4c] sm:$0xf] %vm1264_vm1, %v1547_v54  ;;  %v934_v3 = vmul.f32 0.2, %v778_v51  ;;  %vm836_vm14 = vcmp.ge.f32.partialorder %v642_v57, 0.0 }
 0x11c   : > { %v1577_v1 = vpack.c.bf16 %v993_v62, %v993_v62  ;;  %1316 = vst.msk [vmem:[%s1879_s29 + $0xcc] sm:$0xf] %vm1264_vm1, %v1579_v60  ;;  %v900_v4 = vmul.f32 0.2, %v642_v57  ;;  %v770_v5 = vadd.f32 %v1868_v35, %v1980_v16  ;;  %v653_v6 = vadd.f32 %v1985_v20, %v1868_v35 }
 0x11d   : > { %1282 = vst.msk [vmem:[%s1879_s29 + $0x44] sm:$0xf] %vm1264_vm1, %v1545_v61  ;;  %v966_v7 = vsel %vm838_vm12, %v650_v50, %v902_v2  ;;  %v998_v8 = vsel %vm870_vm13, %v778_v51, %v934_v3  ;;  %v781_v9 = vadd.f32 %v1987_v21, %v1868_v35  ;;  %v645_v10 = vadd.f32 %v1868_v35, %v1989_v25  ;;  %v2050_v14 = vpop.f32.mrb[28].mxu0 }
 0x11e   : > { %1314 = vst.msk [vmem:[%s1879_s29 + $0xc4] sm:$0xf] %vm1264_vm1, %v1577_v1  ;;  %v1550_v11 = vpack.c.bf16 %v966_v7, %v966_v7  ;;  %v1582_v12 = vpack.c.bf16 %v998_v8, %v998_v8  ;;  %v964_v13 = vsel %vm836_vm14, %v642_v57, %v900_v4  ;;  %vm868_vm15 = vcmp.ge.f32.partialorder %v770_v5, 0.0  ;;  %v2052_v15 = vpop.f32.mrb[28].mxu1  ;;  %v2054_v19 = vpop.f32.mrb[29].mxu0 }
 0x11f   : > { %v1548_v16 = vpack.c.bf16 %v964_v13, %v964_v13  ;;  %v932_v17 = vmul.f32 0.2, %v770_v5  ;;  %vm839_vm0 = vcmp.ge.f32.partialorder %v653_v6, 0.0  ;;  %v903_v18 = vmul.f32 0.2, %v653_v6  ;;  %v2066_v27 = vpop.f32.mrb[29].mxu1 }
 0x120   : > { %1287 = vst.msk [vmem:[%s1879_s29 + $0x58] sm:$0xf] %vm1264_vm1, %v1550_v11  ;;  %1319 = vst.msk [vmem:[%s1879_s29 + $0xd8] sm:$0xf] %vm1264_vm1, %v1582_v12  ;;  %vm871_vm2 = vcmp.ge.f32.partialorder %v781_v9, 0.0  ;;  %vm837_vm3 = vcmp.ge.f32.partialorder %v645_v10, 0.0  ;;  %v773_v24 = vadd.f32 %v1868_v35, %v1991_v26  ;;  %v666_v25 = vadd.f32 %v2009_v44, %v1868_v35 }
 0x121   : > { %v935_v20 = vmul.f32 0.2, %v781_v9  ;;  %v901_v21 = vmul.f32 0.2, %v645_v10  ;;  %1285 = vst.msk [vmem:[%s1879_s29 + $0x50] sm:$0xf] %vm1264_vm1, %v1548_v16  ;;  %v996_v22 = vsel %vm868_vm15, %v770_v5, %v932_v17  ;;  %v967_v23 = vsel %vm839_vm0, %v653_v6, %v903_v18 }
 0x122   : > { %v2068_v28 = vpop.f32.mrb[30].mxu0  ;;  %v1580_v29 = vpack.c.bf16 %v996_v22, %v996_v22  ;;  %v1551_v30 = vpack.c.bf16 %v967_v23, %v967_v23  ;;  %v2070_v33 = vpop.f32.mrb[30].mxu1  ;;  %vm869_vm4 = vcmp.ge.f32.partialorder %v773_v24, 0.0  ;;  %v933_v37 = vmul.f32 0.2, %v773_v24 }
 0x123   : > { %v999_v31 = vsel %vm871_vm2, %v781_v9, %v935_v20  ;;  %v965_v32 = vsel %vm837_vm3, %v645_v10, %v901_v21  ;;  %v2072_v34 = vpop.f32.mrb[31].mxu0  ;;  %v2074_v38 = vpop.f32.mrb[31].mxu1  ;;  %vm842_vm5 = vcmp.ge.f32.partialorder %v666_v25, 0.0  ;;  %v906_v39 = vmul.f32 0.2, %v666_v25 }
 0x124   : > { %v1583_v36 = vpack.c.bf16 %v999_v31, %v999_v31  ;;  %v1549_v26 = vpack.c.bf16 %v965_v32, %v965_v32  ;;  %1317 = vst.msk [vmem:[%s1879_s29 + $0xd0] sm:$0xf] %vm1264_vm1, %v1580_v29  ;;  %1288 = vst.msk [vmem:[%s1879_s29 + $0x5c] sm:$0xf] %vm1264_vm1, %v1551_v30  ;;  %v794_v40 = vadd.f32 %v2011_v45, %v1868_v35 }
 0x125   : > { %v658_v41 = vadd.f32 %v1868_v35, %v2019_v52  ;;  %v997_v42 = vsel %vm869_vm4, %v773_v24, %v933_v37  ;;  %v786_v43 = vadd.f32 %v1868_v35, %v2021_v53  ;;  %v669_v44 = vadd.f32 %v2025_v58, %v1868_v35 }
 0x126   : > { %1320 = vst.msk [vmem:[%s1879_s29 + $0xdc] sm:$0xf] %vm1264_vm1, %v1583_v36  ;;  %1286 = vst.msk [vmem:[%s1879_s29 + $0x54] sm:$0xf] %vm1264_vm1, %v1549_v26  ;;  %v797_v46 = vadd.f32 %v2027_v59, %v1868_v35  ;;  %v1581_v45 = vpack.c.bf16 %v997_v42, %v997_v42  ;;  %v970_v47 = vsel %vm842_vm5, %v666_v25, %v906_v39  ;;  %vm874_vm6 = vcmp.ge.f32.partialorder %v794_v40, 0.0 }
 0x127   : > { %v938_v48 = vmul.f32 0.2, %v794_v40  ;;  %v1554_v49 = vpack.c.bf16 %v970_v47, %v970_v47  ;;  %vm840_vm7 = vcmp.ge.f32.partialorder %v658_v41, 0.0  ;;  %v904_v50 = vmul.f32 0.2, %v658_v41 }
 0x128   : > { %vm872_vm8 = vcmp.ge.f32.partialorder %v786_v43, 0.0  ;;  %1318 = vst.msk [vmem:[%s1879_s29 + $0xd4] sm:$0xf] %vm1264_vm1, %v1581_v45  ;;  %v936_v52 = vmul.f32 0.2, %v786_v43  ;;  %vm843_vm9 = vcmp.ge.f32.partialorder %v669_v44, 0.0  ;;  %v661_v60 = vadd.f32 %v1868_v35, %v2030_v63 }
 0x129   : > { %v1002_v51 = vsel %vm874_vm6, %v794_v40, %v938_v48  ;;  %v907_v53 = vmul.f32 0.2, %v669_v44  ;;  %1291 = vst.msk [vmem:[%s1879_s29 + $0x68] sm:$0xf] %vm1264_vm1, %v1554_v49  ;;  %v968_v55 = vsel %vm840_vm7, %v658_v41, %v904_v50  ;;  %vm875_vm10 = vcmp.ge.f32.partialorder %v797_v46, 0.0 }
 0x12a   : > { %v1586_v54 = vpack.c.bf16 %v1002_v51, %v1002_v51  ;;  %v939_v56 = vmul.f32 0.2, %v797_v46  ;;  %v1552_v57 = vpack.c.bf16 %v968_v55, %v968_v55  ;;  %v1000_v58 = vsel %vm872_vm8, %v786_v43, %v936_v52 }
 0x12b   : > { %v971_v59 = vsel %vm843_vm9, %v669_v44, %v907_v53  ;;  %v1584_v61 = vpack.c.bf16 %v1000_v58, %v1000_v58  ;;  %v789_v2 = vadd.f32 %v1868_v35, %v2032_v0  ;;  %vm841_vm11 = vcmp.ge.f32.partialorder %v661_v60, 0.0 }
 0x12c   : > { %1323 = vst.msk [vmem:[%s1879_s29 + $0xe8] sm:$0xf] %vm1264_vm1, %v1586_v54  ;;  %v1555_v62 = vpack.c.bf16 %v971_v59, %v971_v59  ;;  %v1003_v1 = vsel %vm875_vm10, %v797_v46, %v939_v56  ;;  %1289 = vst.msk [vmem:[%s1879_s29 + $0x60] sm:$0xf] %vm1264_vm1, %v1552_v57  ;;  %v905_v4 = vmul.f32 0.2, %v661_v60  ;;  %v682_v5 = vadd.f32 %v2050_v14, %v1868_v35 }
 0x12d   : > { %v1587_v3 = vpack.c.bf16 %v1003_v1, %v1003_v1  ;;  %1321 = vst.msk [vmem:[%s1879_s29 + $0xe0] sm:$0xf] %vm1264_vm1, %v1584_v61  ;;  %vm873_vm12 = vcmp.ge.f32.partialorder %v789_v2, 0.0  ;;  %v937_v63 = vmul.f32 0.2, %v789_v2  ;;  %v810_v6 = vadd.f32 %v2052_v15, %v1868_v35 }
 0x12e   : > { %1292 = vst.msk [vmem:[%s1879_s29 + $0x6c] sm:$0xf] %vm1264_vm1, %v1555_v62  ;;  %v674_v0 = vadd.f32 %v1868_v35, %v2054_v19  ;;  %v969_v7 = vsel %vm841_vm11, %v661_v60, %v905_v4  ;;  %vm846_vm13 = vcmp.ge.f32.partialorder %v682_v5, 0.0  ;;  %v910_v8 = vmul.f32 0.2, %v682_v5 }
 0x12f   : > { %1324 = vst.msk [vmem:[%s1879_s29 + $0xec] sm:$0xf] %vm1264_vm1, %v1587_v3  ;;  %v802_v9 = vadd.f32 %v1868_v35, %v2066_v27  ;;  %v1553_v10 = vpack.c.bf16 %v969_v7, %v969_v7  ;;  %v1001_v11 = vsel %vm873_vm12, %v789_v2, %v937_v63  ;;  %vm878_vm14 = vcmp.ge.f32.partialorder %v810_v6, 0.0 }
 0x130   : > { %v942_v12 = vmul.f32 0.2, %v810_v6  ;;  %v1585_v13 = vpack.c.bf16 %v1001_v11, %v1001_v11  ;;  %v974_v14 = vsel %vm846_vm13, %v682_v5, %v910_v8  ;;  %vm844_vm15 = vcmp.ge.f32.partialorder %v674_v0, 0.0 }
 0x131   : > { %v908_v15 = vmul.f32 0.2, %v674_v0  ;;  %1290 = vst.msk [vmem:[%s1879_s29 + $0x64] sm:$0xf] %vm1264_vm1, %v1553_v10  ;;  %v1558_v16 = vpack.c.bf16 %v974_v14, %v974_v14  ;;  %vm876_vm0 = vcmp.ge.f32.partialorder %v802_v9, 0.0  ;;  %v685_v21 = vadd.f32 %v2068_v28, %v1868_v35 }
 0x132   : > { %v1006_v17 = vsel %vm878_vm14, %v810_v6, %v942_v12  ;;  %v940_v18 = vmul.f32 0.2, %v802_v9  ;;  %1322 = vst.msk [vmem:[%s1879_s29 + $0xe4] sm:$0xf] %vm1264_vm1, %v1585_v13  ;;  %v813_v22 = vadd.f32 %v2070_v33, %v1868_v35  ;;  %v677_v25 = vadd.f32 %v1868_v35, %v2072_v34 }
 0x133   : > { %v1590_v19 = vpack.c.bf16 %v1006_v17, %v1006_v17  ;;  %v972_v20 = vsel %vm844_vm15, %v674_v0, %v908_v15  ;;  %1295 = vst.msk [vmem:[%s1879_s29 + $0x78] sm:$0xf] %vm1264_vm1, %v1558_v16  ;;  %v805_v27 = vadd.f32 %v1868_v35, %v2074_v38  ;;  %vm847_vm2 = vcmp.ge.f32.partialorder %v685_v21, 0.0 }
 0x134   : > { %v1556_v23 = vpack.c.bf16 %v972_v20, %v972_v20  ;;  %v1004_v24 = vsel %vm876_vm0, %v802_v9, %v940_v18  ;;  %v911_v30 = vmul.f32 0.2, %v685_v21  ;;  %vm879_vm3 = vcmp.ge.f32.partialorder %v813_v22, 0.0 }
 0x135   : > { %1327 = vst.msk [vmem:[%s1879_s29 + $0xf8] sm:$0xf] %vm1264_vm1, %v1590_v19  ;;  %v1588_v29 = vpack.c.bf16 %v1004_v24, %v1004_v24  ;;  %v943_v28 = vmul.f32 0.2, %v813_v22  ;;  %vm845_vm4 = vcmp.ge.f32.partialorder %v677_v25, 0.0  ;;  %vm877_vm5 = vcmp.ge.f32.partialorder %v805_v27, 0.0 }
 0x136   : > { %1293 = vst.msk [vmem:[%s1879_s29 + $0x70] sm:$0xf] %vm1264_vm1, %v1556_v23  ;;  %v909_v31 = vmul.f32 0.2, %v677_v25  ;;  %v975_v32 = vsel %vm847_vm2, %v685_v21, %v911_v30  ;;  %v941_v35 = vmul.f32 0.2, %v805_v27 }
 0x137   : > { %1325 = vst.msk [vmem:[%s1879_s29 + $0xf0] sm:$0xf] %vm1264_vm1, %v1588_v29  ;;  %v1559_v33 = vpack.c.bf16 %v975_v32, %v975_v32  ;;  %v1007_v34 = vsel %vm879_vm3, %v813_v22, %v943_v28 }
 0x138   : > { %v973_v36 = vsel %vm845_vm4, %v677_v25, %v909_v31  ;;  %v1591_v26 = vpack.c.bf16 %v1007_v34, %v1007_v34  ;;  %v1005_v38 = vsel %vm877_vm5, %v805_v27, %v941_v35 }
 0x139   : > { %v1557_v37 = vpack.c.bf16 %v973_v36, %v973_v36  ;;  %1296 = vst.msk [vmem:[%s1879_s29 + $0x7c] sm:$0xf] %vm1264_vm1, %v1559_v33  ;;  %v1589_v39 = vpack.c.bf16 %v1005_v38, %v1005_v38 }
 0x13a   : > { %1328 = vst.msk [vmem:[%s1879_s29 + $0xfc] sm:$0xf] %vm1264_vm1, %v1591_v26 }
 0x13b   : > { %1294 = vst.msk [vmem:[%s1879_s29 + $0x74] sm:$0xf] %vm1264_vm1, %v1557_v37  ;;  %1326 = vst.msk [vmem:[%s1879_s29 + $0xf4] sm:$0xf] %vm1264_vm1, %v1589_v39 }
 0x13c PF: > { %s13_s12 = sadd.s32 1, %s1752_s12  }
 0x13d   : > { %p10_p4 = scmp.ge.s32.totalorder %s13_s12, 66  }
 0x13f   :  { %12 = sbr.rel (!%p10_p4) target bundleno = 1 (0x1), region = 62 }

</bundles_post_ra>
